<compile_context>
chip_gen: v7x
topology: tpu7x:2x2x1
jax: 0.10.0
libtpu: 0.0.40
codegen_flags: <defaults>
</compile_context>

<pallas_src>
import functools

import jax
import jax.numpy as jnp
from jax import lax
from jax.experimental import pallas as pl
from jax.experimental.pallas import tpu as pltpu

EPS = 1e-5
HALO = 128    # lane halo (one full vreg lane width) on each side of the flat image


# ----------------------------- Pallas kernels ------------------------------ #

def _dw_relu_conv_kernel(x_ref, w_ref, y_ref, s_ref, ss_ref, halo_ref, *,
                         k, pad, H, W):
    """ReLU -> depthwise kxk conv (stride 1) + per-image BN1 partial moments.

    x_ref:    (1, CP, H*W)  channel-major, flat spatial on lanes
    w_ref:    (CP, k*k)     per-channel depthwise taps (zero rows for padding)
    y_ref:    (1, CP, H*W)
    s/ss_ref: (1, CP, 1)    per-image sum / sum-of-squares over spatial
    halo_ref: (CP, HALO + H*W + HALO)  lane-halo scratch
    """
    CP = x_ref.shape[1]
    M = H * W
    a = jnp.maximum(x_ref[0], 0.0)                         # (CP, M)

    # Lane-halo scratch: 2 vreg-rows of zeros + one aligned interior store.
    # Out-of-image row reads land in the zero halo; column wrap is masked below.
    zero_halo = jnp.zeros((CP, HALO), jnp.float32)
    halo_ref[:, :HALO] = zero_halo
    halo_ref[:, HALO:HALO + M] = a
    halo_ref[:, HALO + M:] = zero_halo

    col = lax.broadcasted_iota(jnp.int32, (1, M), 1) % W   # output column index

    acc = jnp.zeros((CP, M), jnp.float32)
    for ky in range(k):
        for kx in range(k):
            t = ky * k + kx
            d = (ky - pad) * W + (kx - pad)                # flat-lane shift
            win = halo_ref[:, HALO + d:HALO + d + M]       # (CP, M) shifted window
            w_tap = w_ref[:, t:t + 1]                      # (CP, 1) per-channel tap
            if kx == pad:                                  # zero column shift: no mask
                acc = acc + win * w_tap
            else:
                cv = (col + (kx - pad) >= 0) & (col + (kx - pad) < W)
                acc = acc + jnp.where(cv, win, 0.0) * w_tap

    y_ref[0] = acc
    s_ref[0] = jnp.sum(acc, axis=1, keepdims=True)
    ss_ref[0] = jnp.sum(acc * acc, axis=1, keepdims=True)


def _bn_relu_conv_kernel(y1_ref, scale_ref, shift_ref, w_ref,
                         y2_ref, s_ref, ss_ref, halo_ref, *, k, pad, H, W):
    """BN1 apply + ReLU + full kxk conv as ONE im2col matmul + BN2 moments.

    y1_ref:       (1, CP, H*W)
    scale/shift:  (CP, 1)   precomputed BN1 scale/shift (zeros for padded rows)
    w_ref:        (C_out, k*k*CP)  column t*CP + c  <->  tap t, channel c
    y2_ref:       (1, C_out, H*W)
    s/ss_ref:     (1, C_out, 1)
    halo_ref:     (CP, HALO + H*W + HALO)
    """
    CP = y1_ref.shape[1]
    M = H * W
    a = jnp.maximum(y1_ref[0] * scale_ref[...] + shift_ref[...], 0.0)   # (CP, M)

    zero_halo = jnp.zeros((CP, HALO), jnp.float32)
    halo_ref[:, :HALO] = zero_halo
    halo_ref[:, HALO:HALO + M] = a
    halo_ref[:, HALO + M:] = zero_halo

    col = lax.broadcasted_iota(jnp.int32, (1, M), 1) % W

    # im2col right operand: k*k lane-shifted copies stacked along sublanes.
    # CP is a multiple of 8, so each block is an aligned 8-sublane group.
    blocks = []
    for ky in range(k):
        for kx in range(k):
            d = (ky - pad) * W + (kx - pad)
            win = halo_ref[:, HALO + d:HALO + d + M]
            if kx == pad:
                blocks.append(win)
            else:
                cv = (col + (kx - pad) >= 0) & (col + (kx - pad) < W)
                blocks.append(jnp.where(cv, win, 0.0))
    b_mat = jnp.concatenate(blocks, axis=0)                # (k*k*CP, M)

    out = jnp.dot(w_ref[...], b_mat,
                  preferred_element_type=jnp.float32)      # (C_out, M), K = k*k*CP
    y2_ref[0] = out
    s_ref[0] = jnp.sum(out, axis=1, keepdims=True)
    ss_ref[0] = jnp.sum(out * out, axis=1, keepdims=True)


# ------------------------------- wrapper ----------------------------------- #

def _bn_scale_shift(s, ss, gamma, beta, count):
    """Fold per-image moment sums into BatchNorm scale/shift (channel-major)."""
    s_tot = jnp.sum(s, axis=0)                             # (C, 1)
    ss_tot = jnp.sum(ss, axis=0)                           # (C, 1)
    mean = s_tot / count
    var = jnp.maximum(ss_tot / count - mean * mean, 0.0)   # clamp f32 cancellation
    scale = lax.rsqrt(var + EPS) * gamma
    shift = beta - mean * scale
    return scale, shift


def sep_conv_forward(x_nchw, params, *, kernel_size, stride, padding):
    """SepConv forward. x_nchw: (N, C_in, H, W) -> (N, C_out, H, W) (stride 1)."""
    w_dw_oihw, g1, b1, w_full_oihw, g2, b2 = params
    k, p = kernel_size, padding
    # TODO(synk): stride=2 (DARTS reduction cells) needs a strided flat-spatial
    #             gather or a 2-D-layout fallback; only stride=1 is implemented.
    assert stride == 1, "only stride=1 SepConv is implemented"
    assert k == 2 * p + 1, "expects 'same' conv (kernel_size == 2*padding + 1)"

    N, C_in, H, W = x_nchw.shape
    C_out = w_full_oihw.shape[0]
    M = H * W
    assert p * (W + 1) <= HALO, "lane halo too small for this W / padding"

    CP = -(-C_in // 8) * 8                        # channels padded to sublane group
    x = x_nchw.reshape(N, C_in, M).astype(jnp.float32)
    if CP != C_in:
        x = jnp.pad(x, ((0, 0), (0, CP - C_in), (0, 0)))

    # One-time weight / affine repacking (pre-packed offline in production).
    w_dw = w_dw_oihw.reshape(C_in, k * k).astype(jnp.float32)
    w_dw = jnp.pad(w_dw, ((0, CP - C_in), (0, 0)))
    # w2[o, t*CP + c] = w_full[o, c, ky, kx],  t = ky*k + kx
    w2 = jnp.transpose(w_full_oihw.astype(jnp.float32), (0, 2, 3, 1))
    w2 = jnp.pad(w2, ((0, 0), (0, 0), (0, 0), (0, CP - C_in)))
    w2 = w2.reshape(C_out, k * k * CP)
    g1p = jnp.pad(g1.astype(jnp.float32), (0, CP - C_in)).reshape(CP, 1)
    b1p = jnp.pad(b1.astype(jnp.float32), (0, CP - C_in)).reshape(CP, 1)
    g2c = g2.astype(jnp.float32).reshape(C_out, 1)
    b2c = b2.astype(jnp.float32).reshape(C_out, 1)

    cparams = pltpu.CompilerParams(dimension_semantics=("parallel",))

    # ---- call 1: ReLU -> depthwise conv + per-image BN1 moments ------------ #
    y1, s1, ss1 = pl.pallas_call(
        functools.partial(_dw_relu_conv_kernel, k=k, pad=p, H=H, W=W),
        grid=(N,),
        in_specs=[
            pl.BlockSpec((1, CP, M), lambda n: (n, 0, 0)),
            pl.BlockSpec((CP, k * k), lambda n: (0, 0)),
        ],
        out_specs=(
            pl.BlockSpec((1, CP, M), lambda n: (n, 0, 0)),
            pl.BlockSpec((1, CP, 1), lambda n: (n, 0, 0)),
            pl.BlockSpec((1, CP, 1), lambda n: (n, 0, 0)),
        ),
        out_shape=(
            jax.ShapeDtypeStruct((N, CP, M), jnp.float32),
            jax.ShapeDtypeStruct((N, CP, 1), jnp.float32),
            jax.ShapeDtypeStruct((N, CP, 1), jnp.float32),
        ),
        scratch_shapes=[pltpu.VMEM((CP, M + 2 * HALO), jnp.float32)],
        compiler_params=cparams,
    )(x, w_dw)

    # BN1 global scale/shift: two tiny XLA reduces over the per-image moments.
    scale1, shift1 = _bn_scale_shift(s1, ss1, g1p, b1p, N * M)

    # ---- call 2: BN1 apply + ReLU + full conv (one im2col matmul) + moments - #
    y2, s2, ss2 = pl.pallas_call(
        functools.partial(_bn_relu_conv_kernel, k=k, pad=p, H=H, W=W),
        grid=(N,),
        in_specs=[
            pl.BlockSpec((1, CP, M), lambda n: (n, 0, 0)),
            pl.BlockSpec((CP, 1), lambda n: (0, 0)),
            pl.BlockSpec((CP, 1), lambda n: (0, 0)),
            pl.BlockSpec((C_out, k * k * CP), lambda n: (0, 0)),
        ],
        out_specs=(
            pl.BlockSpec((1, C_out, M), lambda n: (n, 0, 0)),
            pl.BlockSpec((1, C_out, 1), lambda n: (n, 0, 0)),
            pl.BlockSpec((1, C_out, 1), lambda n: (n, 0, 0)),
        ),
        out_shape=(
            jax.ShapeDtypeStruct((N, C_out, M), jnp.float32),
            jax.ShapeDtypeStruct((N, C_out, 1), jnp.float32),
            jax.ShapeDtypeStruct((N, C_out, 1), jnp.float32),
        ),
        scratch_shapes=[pltpu.VMEM((CP, M + 2 * HALO), jnp.float32)],
        compiler_params=cparams,
    )(y1, scale1, shift1, w2)

    # ---- BN2 apply + output reshape in plain XLA (no extra kernel launch) -- #
    scale2, shift2 = _bn_scale_shift(s2, ss2, g2c, b2c, N * M)
    out = y2 * scale2[None, :, :] + shift2[None, :, :]
    return out.reshape(N, C_out, H, W)          # already NCHW: no transpose needed


# --------------------------- pure-JAX reference ----------------------------- #

def _reference(x, w_dw_oihw, w_full_oihw, g1, b1, g2, b2, *,
               stride, padding, groups):
    def bn(y, g, b):
        mean = jnp.mean(y, axis=(0, 2, 3), keepdims=True)
        var = jnp.mean((y - mean) ** 2, axis=(0, 2, 3), keepdims=True)
        return ((y - mean) * lax.rsqrt(var + EPS)) * g.reshape(1, -1, 1, 1) \
            + b.reshape(1, -1, 1, 1)

    a = jnp.maximum(x, 0.0)
    h = lax.conv_general_dilated(a, w_dw_oihw, (stride, stride),
                                 [(padding, padding)] * 2,
                                 feature_group_count=groups,
                                 dimension_numbers=("NCHW", "OIHW", "NCHW"))
    h = bn(h, g1, b1)
    a2 = jnp.maximum(h, 0.0)
    h2 = lax.conv_general_dilated(a2, w_full_oihw, (1, 1),
                                  [(padding, padding)] * 2,
                                  dimension_numbers=("NCHW", "OIHW", "NCHW"))
    return bn(h2, g2, b2)


# ---------------------------------- main ------------------------------------ #

if __name__ == "__main__":
    N, C_in, C_out, H, W = 2, 4, 8, 16, 16
    K, STRIDE, PAD = 3, 1, 1

    key = jax.random.PRNGKey(0)
    k_x, k_dw, k_full = jax.random.split(key, 3)
    x_nchw = jax.random.normal(k_x, (N, C_in, H, W), jnp.float32)

    # Deterministic synthetic weights in PyTorch (OIHW) layout.
    w_dw_oihw = 0.2 * jax.random.normal(k_dw, (C_in, 1, K, K), jnp.float32)
    w_full_oihw = 0.2 * jax.random.normal(k_full, (C_out, C_in, K, K), jnp.float32)
    # BatchNorm affine params at their PyTorch defaults (weight=1, bias=0).
    g1, b1 = jnp.ones((C_in,), jnp.float32), jnp.zeros((C_in,), jnp.float32)
    g2, b2 = jnp.ones((C_out,), jnp.float32), jnp.zeros((C_out,), jnp.float32)

    fwd = jax.jit(functools.partial(sep_conv_forward, kernel_size=K,
                                    stride=STRIDE, padding=PAD))
    out = fwd(x_nchw, (w_dw_oihw, g1, b1, w_full_oihw, g2, b2))
    out = jax.block_until_ready(out)

    ref = _reference(x_nchw, w_dw_oihw, w_full_oihw, g1, b1, g2, b2,
                     stride=STRIDE, padding=PAD, groups=C_in)
    assert out.shape == ref.shape == (N, C_out, H, W), (out.shape, ref.shape)
    max_err = float(jnp.max(jnp.abs(out - ref)))
    assert max_err < 1e-3, f"mismatch vs reference: {max_err}"
    print("KERNEL_OK")
</pallas_src>

<mosaic_0001>
module attributes {stable_mosaic.version = 11 : i64} {
  func.func @_dw_relu_conv_kernel(%arg0: i32, %arg1: memref<1x8x256xf32, #tpu.memory_space<vmem>>, %arg2: memref<8x9xf32, #tpu.memory_space<vmem>>, %arg3: memref<1x8x256xf32, #tpu.memory_space<vmem>>, %arg4: memref<1x8x1xf32, #tpu.memory_space<vmem>>, %arg5: memref<1x8x1xf32, #tpu.memory_space<vmem>>, %arg6: memref<8x512xf32, #tpu.memory_space<vmem>>) attributes {dimension_semantics = [#tpu.dimension_semantics<parallel>], iteration_bounds = array<i64: 2>, scalar_prefetch = 0 : i64, scratch_operands = 1 : i64, tpu.core_type = #tpu.core_type<tc>, window_params = [{transform_indices = @transform_0, window_bounds = array<i64: 1, 8, 256>}, {pipeline_mode = #tpu.pipeline_mode<synchronous>, transform_indices = @transform_1, window_bounds = array<i64: 8, 9>}, {transform_indices = @transform_2, window_bounds = array<i64: 1, 8, 256>}, {transform_indices = @transform_3, window_bounds = array<i64: 1, 8, 1>}, {transform_indices = @transform_4, window_bounds = array<i64: 1, 8, 1>}]} {
    %c0 = arith.constant 0 : index
    %c0_0 = arith.constant 0 : index
    %c0_1 = arith.constant 0 : index
    %0 = vector.load %arg1[%c0, %c0_0, %c0_1] : memref<1x8x256xf32, #tpu.memory_space<vmem>>, vector<1x8x256xf32>
    %1 = vector.shape_cast %0 : vector<1x8x256xf32> to vector<8x256xf32>
    %cst = arith.constant 0.000000e+00 : f32
    %2 = vector.broadcast %cst : f32 to vector<8x256xf32>
    %3 = arith.maximumf %1, %2 : vector<8x256xf32>
    %cst_2 = arith.constant 0.000000e+00 : f32
    %4 = vector.broadcast %cst_2 : f32 to vector<8x128xf32>
    %c0_3 = arith.constant 0 : index
    %c0_4 = arith.constant 0 : index
    %5 = vector.load %arg6[%c0_3, %c0_4] : memref<8x512xf32, #tpu.memory_space<vmem>>, vector<8x128xf32>
    tpu.vector_store %arg6[%c0_3, %c0_4], %4 {strides = array<i32>} : memref<8x512xf32, #tpu.memory_space<vmem>>, vector<8x128xf32>,
    %c0_5 = arith.constant 0 : index
    %c128 = arith.constant 128 : index
    %6 = vector.load %arg6[%c0_5, %c128] : memref<8x512xf32, #tpu.memory_space<vmem>>, vector<8x256xf32>
    tpu.vector_store %arg6[%c0_5, %c128], %3 {strides = array<i32>} : memref<8x512xf32, #tpu.memory_space<vmem>>, vector<8x256xf32>,
    %c0_6 = arith.constant 0 : index
    %c384 = arith.constant 384 : index
    %7 = vector.load %arg6[%c0_6, %c384] : memref<8x512xf32, #tpu.memory_space<vmem>>, vector<8x128xf32>
    tpu.vector_store %arg6[%c0_6, %c384], %4 {strides = array<i32>} : memref<8x512xf32, #tpu.memory_space<vmem>>, vector<8x128xf32>,
    %8 = tpu.iota {dimensions = array<i32: 1>} : vector<1x256xi32>
    %c16_i32 = arith.constant 16 : i32
    %c0_i32 = arith.constant 0 : i32
    %9 = arith.cmpi eq, %c16_i32, %c0_i32 : i32
    %c1_i32 = arith.constant 1 : i32
    %10 = arith.select %9, %c1_i32, %c16_i32 : i32
    %11 = vector.broadcast %10 : i32 to vector<1x256xi32>
    %12 = arith.remsi %8, %11 : vector<1x256xi32>
    %c0_i32_7 = arith.constant 0 : i32
    %13 = vector.broadcast %c0_i32_7 : i32 to vector<1x256xi32>
    %14 = arith.cmpi ne, %12, %13 : vector<1x256xi32>
    %c0_i32_8 = arith.constant 0 : i32
    %15 = vector.broadcast %c0_i32_8 : i32 to vector<1x256xi32>
    %16 = arith.cmpi slt, %12, %15 : vector<1x256xi32>
    %c0_i32_9 = arith.constant 0 : i32
    %17 = arith.cmpi slt, %10, %c0_i32_9 : i32
    %18 = vector.broadcast %17 : i1 to vector<1x256xi1>
    %19 = vector.broadcast %18 : vector<1x256xi1> to vector<1x256xi1>
    %20 = arith.xori %16, %19 : vector<1x256xi1>
    %21 = arith.andi %20, %14 : vector<1x256xi1>
    %22 = vector.broadcast %10 : i32 to vector<1x256xi32>
    %23 = arith.addi %12, %22 : vector<1x256xi32>
    %24 = arith.select %21, %23, %12 : vector<1x256xi1>, vector<1x256xi32>
    %cst_10 = arith.constant 0.000000e+00 : f32
    %25 = vector.broadcast %cst_10 : f32 to vector<8x256xf32>
    %c0_11 = arith.constant 0 : index
    %c111 = arith.constant 111 : index
    %26 = vector.load %arg6[%c0_11, %c111] : memref<8x512xf32, #tpu.memory_space<vmem>>, vector<8x256xf32>
    %c0_12 = arith.constant 0 : index
    %c0_13 = arith.constant 0 : index
    %27 = vector.load %arg2[%c0_12, %c0_13] : memref<8x9xf32, #tpu.memory_space<vmem>>, vector<8x1xf32>
    %c-1_i32 = arith.constant -1 : i32
    %28 = vector.broadcast %c-1_i32 : i32 to vector<1x256xi32>
    %29 = arith.addi %24, %28 : vector<1x256xi32>
    %c0_i32_14 = arith.constant 0 : i32
    %30 = vector.broadcast %c0_i32_14 : i32 to vector<1x256xi32>
    %31 = arith.cmpi sge, %29, %30 : vector<1x256xi32>
    %c-1_i32_15 = arith.constant -1 : i32
    %32 = vector.broadcast %c-1_i32_15 : i32 to vector<1x256xi32>
    %33 = arith.addi %24, %32 : vector<1x256xi32>
    %c16_i32_16 = arith.constant 16 : i32
    %34 = vector.broadcast %c16_i32_16 : i32 to vector<1x256xi32>
    %35 = arith.cmpi slt, %33, %34 : vector<1x256xi32>
    %36 = arith.andi %31, %35 : vector<1x256xi1>
    %cst_17 = arith.constant 0.000000e+00 : f32
    %37 = vector.shape_cast %36 : vector<1x256xi1> to vector<1x256xi1>
    %38 = vector.broadcast %37 : vector<1x256xi1> to vector<8x256xi1>
    %39 = vector.broadcast %cst_17 : f32 to vector<8x256xf32>
    %40 = arith.select %38, %26, %39 : vector<8x256xi1>, vector<8x256xf32>
    %41 = vector.broadcast %27 : vector<8x1xf32> to vector<8x256xf32>
    %42 = arith.mulf %40, %41 : vector<8x256xf32>
    %43 = arith.addf %25, %42 : vector<8x256xf32>
    %c0_18 = arith.constant 0 : index
    %c112 = arith.constant 112 : index
    %44 = vector.load %arg6[%c0_18, %c112] : memref<8x512xf32, #tpu.memory_space<vmem>>, vector<8x256xf32>
    %c0_19 = arith.constant 0 : index
    %c1 = arith.constant 1 : index
    %45 = vector.load %arg2[%c0_19, %c1] : memref<8x9xf32, #tpu.memory_space<vmem>>, vector<8x1xf32>
    %46 = vector.broadcast %45 : vector<8x1xf32> to vector<8x256xf32>
    %47 = arith.mulf %44, %46 : vector<8x256xf32>
    %48 = arith.addf %43, %47 : vector<8x256xf32>
    %c0_20 = arith.constant 0 : index
    %c113 = arith.constant 113 : index
    %49 = vector.load %arg6[%c0_20, %c113] : memref<8x512xf32, #tpu.memory_space<vmem>>, vector<8x256xf32>
    %c0_21 = arith.constant 0 : index
    %c2 = arith.constant 2 : index
    %50 = vector.load %arg2[%c0_21, %c2] : memref<8x9xf32, #tpu.memory_space<vmem>>, vector<8x1xf32>
    %c1_i32_22 = arith.constant 1 : i32
    %51 = vector.broadcast %c1_i32_22 : i32 to vector<1x256xi32>
    %52 = arith.addi %24, %51 : vector<1x256xi32>
    %c0_i32_23 = arith.constant 0 : i32
    %53 = vector.broadcast %c0_i32_23 : i32 to vector<1x256xi32>
    %54 = arith.cmpi sge, %52, %53 : vector<1x256xi32>
    %c1_i32_24 = arith.constant 1 : i32
    %55 = vector.broadcast %c1_i32_24 : i32 to vector<1x256xi32>
    %56 = arith.addi %24, %55 : vector<1x256xi32>
    %c16_i32_25 = arith.constant 16 : i32
    %57 = vector.broadcast %c16_i32_25 : i32 to vector<1x256xi32>
    %58 = arith.cmpi slt, %56, %57 : vector<1x256xi32>
    %59 = arith.andi %54, %58 : vector<1x256xi1>
    %cst_26 = arith.constant 0.000000e+00 : f32
    %60 = vector.shape_cast %59 : vector<1x256xi1> to vector<1x256xi1>
    %61 = vector.broadcast %60 : vector<1x256xi1> to vector<8x256xi1>
    %62 = vector.broadcast %cst_26 : f32 to vector<8x256xf32>
    %63 = arith.select %61, %49, %62 : vector<8x256xi1>, vector<8x256xf32>
    %64 = vector.broadcast %50 : vector<8x1xf32> to vector<8x256xf32>
    %65 = arith.mulf %63, %64 : vector<8x256xf32>
    %66 = arith.addf %48, %65 : vector<8x256xf32>
    %c0_27 = arith.constant 0 : index
    %c127 = arith.constant 127 : index
    %67 = vector.load %arg6[%c0_27, %c127] : memref<8x512xf32, #tpu.memory_space<vmem>>, vector<8x256xf32>
    %c0_28 = arith.constant 0 : index
    %c3 = arith.constant 3 : index
    %68 = vector.load %arg2[%c0_28, %c3] : memref<8x9xf32, #tpu.memory_space<vmem>>, vector<8x1xf32>
    %c-1_i32_29 = arith.constant -1 : i32
    %69 = vector.broadcast %c-1_i32_29 : i32 to vector<1x256xi32>
    %70 = arith.addi %24, %69 : vector<1x256xi32>
    %c0_i32_30 = arith.constant 0 : i32
    %71 = vector.broadcast %c0_i32_30 : i32 to vector<1x256xi32>
    %72 = arith.cmpi sge, %70, %71 : vector<1x256xi32>
    %c-1_i32_31 = arith.constant -1 : i32
    %73 = vector.broadcast %c-1_i32_31 : i32 to vector<1x256xi32>
    %74 = arith.addi %24, %73 : vector<1x256xi32>
    %c16_i32_32 = arith.constant 16 : i32
    %75 = vector.broadcast %c16_i32_32 : i32 to vector<1x256xi32>
    %76 = arith.cmpi slt, %74, %75 : vector<1x256xi32>
    %77 = arith.andi %72, %76 : vector<1x256xi1>
    %cst_33 = arith.constant 0.000000e+00 : f32
    %78 = vector.shape_cast %77 : vector<1x256xi1> to vector<1x256xi1>
    %79 = vector.broadcast %78 : vector<1x256xi1> to vector<8x256xi1>
    %80 = vector.broadcast %cst_33 : f32 to vector<8x256xf32>
    %81 = arith.select %79, %67, %80 : vector<8x256xi1>, vector<8x256xf32>
    %82 = vector.broadcast %68 : vector<8x1xf32> to vector<8x256xf32>
    %83 = arith.mulf %81, %82 : vector<8x256xf32>
    %84 = arith.addf %66, %83 : vector<8x256xf32>
    %c0_34 = arith.constant 0 : index
    %c128_35 = arith.constant 128 : index
    %85 = vector.load %arg6[%c0_34, %c128_35] : memref<8x512xf32, #tpu.memory_space<vmem>>, vector<8x256xf32>
    %c0_36 = arith.constant 0 : index
    %c4 = arith.constant 4 : index
    %86 = vector.load %arg2[%c0_36, %c4] : memref<8x9xf32, #tpu.memory_space<vmem>>, vector<8x1xf32>
    %87 = vector.broadcast %86 : vector<8x1xf32> to vector<8x256xf32>
    %88 = arith.mulf %85, %87 : vector<8x256xf32>
    %89 = arith.addf %84, %88 : vector<8x256xf32>
    %c0_37 = arith.constant 0 : index
    %c129 = arith.constant 129 : index
    %90 = vector.load %arg6[%c0_37, %c129] : memref<8x512xf32, #tpu.memory_space<vmem>>, vector<8x256xf32>
    %c0_38 = arith.constant 0 : index
    %c5 = arith.constant 5 : index
    %91 = vector.load %arg2[%c0_38, %c5] : memref<8x9xf32, #tpu.memory_space<vmem>>, vector<8x1xf32>
    %c1_i32_39 = arith.constant 1 : i32
    %92 = vector.broadcast %c1_i32_39 : i32 to vector<1x256xi32>
    %93 = arith.addi %24, %92 : vector<1x256xi32>
    %c0_i32_40 = arith.constant 0 : i32
    %94 = vector.broadcast %c0_i32_40 : i32 to vector<1x256xi32>
    %95 = arith.cmpi sge, %93, %94 : vector<1x256xi32>
    %c1_i32_41 = arith.constant 1 : i32
    %96 = vector.broadcast %c1_i32_41 : i32 to vector<1x256xi32>
    %97 = arith.addi %24, %96 : vector<1x256xi32>
    %c16_i32_42 = arith.constant 16 : i32
    %98 = vector.broadcast %c16_i32_42 : i32 to vector<1x256xi32>
    %99 = arith.cmpi slt, %97, %98 : vector<1x256xi32>
    %100 = arith.andi %95, %99 : vector<1x256xi1>
    %cst_43 = arith.constant 0.000000e+00 : f32
    %101 = vector.shape_cast %100 : vector<1x256xi1> to vector<1x256xi1>
    %102 = vector.broadcast %101 : vector<1x256xi1> to vector<8x256xi1>
    %103 = vector.broadcast %cst_43 : f32 to vector<8x256xf32>
    %104 = arith.select %102, %90, %103 : vector<8x256xi1>, vector<8x256xf32>
    %105 = vector.broadcast %91 : vector<8x1xf32> to vector<8x256xf32>
    %106 = arith.mulf %104, %105 : vector<8x256xf32>
    %107 = arith.addf %89, %106 : vector<8x256xf32>
    %c0_44 = arith.constant 0 : index
    %c143 = arith.constant 143 : index
    %108 = vector.load %arg6[%c0_44, %c143] : memref<8x512xf32, #tpu.memory_space<vmem>>, vector<8x256xf32>
    %c0_45 = arith.constant 0 : index
    %c6 = arith.constant 6 : index
    %109 = vector.load %arg2[%c0_45, %c6] : memref<8x9xf32, #tpu.memory_space<vmem>>, vector<8x1xf32>
    %c-1_i32_46 = arith.constant -1 : i32
    %110 = vector.broadcast %c-1_i32_46 : i32 to vector<1x256xi32>
    %111 = arith.addi %24, %110 : vector<1x256xi32>
    %c0_i32_47 = arith.constant 0 : i32
    %112 = vector.broadcast %c0_i32_47 : i32 to vector<1x256xi32>
    %113 = arith.cmpi sge, %111, %112 : vector<1x256xi32>
    %c-1_i32_48 = arith.constant -1 : i32
    %114 = vector.broadcast %c-1_i32_48 : i32 to vector<1x256xi32>
    %115 = arith.addi %24, %114 : vector<1x256xi32>
    %c16_i32_49 = arith.constant 16 : i32
    %116 = vector.broadcast %c16_i32_49 : i32 to vector<1x256xi32>
    %117 = arith.cmpi slt, %115, %116 : vector<1x256xi32>
    %118 = arith.andi %113, %117 : vector<1x256xi1>
    %cst_50 = arith.constant 0.000000e+00 : f32
    %119 = vector.shape_cast %118 : vector<1x256xi1> to vector<1x256xi1>
    %120 = vector.broadcast %119 : vector<1x256xi1> to vector<8x256xi1>
    %121 = vector.broadcast %cst_50 : f32 to vector<8x256xf32>
    %122 = arith.select %120, %108, %121 : vector<8x256xi1>, vector<8x256xf32>
    %123 = vector.broadcast %109 : vector<8x1xf32> to vector<8x256xf32>
    %124 = arith.mulf %122, %123 : vector<8x256xf32>
    %125 = arith.addf %107, %124 : vector<8x256xf32>
    %c0_51 = arith.constant 0 : index
    %c144 = arith.constant 144 : index
    %126 = vector.load %arg6[%c0_51, %c144] : memref<8x512xf32, #tpu.memory_space<vmem>>, vector<8x256xf32>
    %c0_52 = arith.constant 0 : index
    %c7 = arith.constant 7 : index
    %127 = vector.load %arg2[%c0_52, %c7] : memref<8x9xf32, #tpu.memory_space<vmem>>, vector<8x1xf32>
    %128 = vector.broadcast %127 : vector<8x1xf32> to vector<8x256xf32>
    %129 = arith.mulf %126, %128 : vector<8x256xf32>
    %130 = arith.addf %125, %129 : vector<8x256xf32>
    %c0_53 = arith.constant 0 : index
    %c145 = arith.constant 145 : index
    %131 = vector.load %arg6[%c0_53, %c145] : memref<8x512xf32, #tpu.memory_space<vmem>>, vector<8x256xf32>
    %c0_54 = arith.constant 0 : index
    %c8 = arith.constant 8 : index
    %132 = vector.load %arg2[%c0_54, %c8] : memref<8x9xf32, #tpu.memory_space<vmem>>, vector<8x1xf32>
    %c1_i32_55 = arith.constant 1 : i32
    %133 = vector.broadcast %c1_i32_55 : i32 to vector<1x256xi32>
    %134 = arith.addi %24, %133 : vector<1x256xi32>
    %c0_i32_56 = arith.constant 0 : i32
    %135 = vector.broadcast %c0_i32_56 : i32 to vector<1x256xi32>
    %136 = arith.cmpi sge, %134, %135 : vector<1x256xi32>
    %c1_i32_57 = arith.constant 1 : i32
    %137 = vector.broadcast %c1_i32_57 : i32 to vector<1x256xi32>
    %138 = arith.addi %24, %137 : vector<1x256xi32>
    %c16_i32_58 = arith.constant 16 : i32
    %139 = vector.broadcast %c16_i32_58 : i32 to vector<1x256xi32>
    %140 = arith.cmpi slt, %138, %139 : vector<1x256xi32>
    %141 = arith.andi %136, %140 : vector<1x256xi1>
    %cst_59 = arith.constant 0.000000e+00 : f32
    %142 = vector.shape_cast %141 : vector<1x256xi1> to vector<1x256xi1>
    %143 = vector.broadcast %142 : vector<1x256xi1> to vector<8x256xi1>
    %144 = vector.broadcast %cst_59 : f32 to vector<8x256xf32>
    %145 = arith.select %143, %131, %144 : vector<8x256xi1>, vector<8x256xf32>
    %146 = vector.broadcast %132 : vector<8x1xf32> to vector<8x256xf32>
    %147 = arith.mulf %145, %146 : vector<8x256xf32>
    %148 = arith.addf %130, %147 : vector<8x256xf32>
    %c0_60 = arith.constant 0 : index
    %c0_61 = arith.constant 0 : index
    %c0_62 = arith.constant 0 : index
    %149 = vector.load %arg3[%c0_60, %c0_61, %c0_62] : memref<1x8x256xf32, #tpu.memory_space<vmem>>, vector<1x8x256xf32>
    %150 = vector.shape_cast %149 : vector<1x8x256xf32> to vector<8x256xf32>
    %151 = vector.shape_cast %148 : vector<8x256xf32> to vector<1x8x256xf32>
    tpu.vector_store %arg3[%c0_60, %c0_61, %c0_62], %151 {strides = array<i32>} : memref<1x8x256xf32, #tpu.memory_space<vmem>>, vector<1x8x256xf32>,
    %cst_63 = arith.constant dense<0.000000e+00> : vector<8xf32>
    %152 = vector.multi_reduction <add>, %148, %cst_63 [1] : vector<8x256xf32> to vector<8xf32>
    %153 = vector.shape_cast %152 : vector<8xf32> to vector<8x1xf32>
    %c0_64 = arith.constant 0 : index
    %c0_65 = arith.constant 0 : index
    %c0_66 = arith.constant 0 : index
    %154 = vector.load %arg4[%c0_64, %c0_65, %c0_66] : memref<1x8x1xf32, #tpu.memory_space<vmem>>, vector<1x8x1xf32>
    %155 = vector.shape_cast %154 : vector<1x8x1xf32> to vector<8x1xf32>
    %156 = vector.shape_cast %153 : vector<8x1xf32> to vector<1x8x1xf32>
    tpu.vector_store %arg4[%c0_64, %c0_65, %c0_66], %156 {strides = array<i32>} : memref<1x8x1xf32, #tpu.memory_space<vmem>>, vector<1x8x1xf32>,
    %157 = arith.mulf %148, %148 : vector<8x256xf32>
    %cst_67 = arith.constant dense<0.000000e+00> : vector<8xf32>
    %158 = vector.multi_reduction <add>, %157, %cst_67 [1] : vector<8x256xf32> to vector<8xf32>
    %159 = vector.shape_cast %158 : vector<8xf32> to vector<8x1xf32>
    %c0_68 = arith.constant 0 : index
    %c0_69 = arith.constant 0 : index
    %c0_70 = arith.constant 0 : index
    %160 = vector.load %arg5[%c0_68, %c0_69, %c0_70] : memref<1x8x1xf32, #tpu.memory_space<vmem>>, vector<1x8x1xf32>
    %161 = vector.shape_cast %160 : vector<1x8x1xf32> to vector<8x1xf32>
    %162 = vector.shape_cast %159 : vector<8x1xf32> to vector<1x8x1xf32>
    tpu.vector_store %arg5[%c0_68, %c0_69, %c0_70], %162 {strides = array<i32>} : memref<1x8x1xf32, #tpu.memory_space<vmem>>, vector<1x8x1xf32>,
    return
  }
  func.func @transform_0(%arg0: i32) -> (i32, i32, i32) {
    %c0_i32 = arith.constant 0 : i32
    %c0_i32_0 = arith.constant 0 : i32
    %c0_i32_1 = arith.constant 0 : i32
    return %arg0, %c0_i32, %c0_i32_0 : i32, i32, i32
  }
  func.func @transform_1(%arg0: i32) -> (i32, i32) {
    %c0_i32 = arith.constant 0 : i32
    %c0_i32_0 = arith.constant 0 : i32
    %c0_i32_1 = arith.constant 0 : i32
    return %c0_i32, %c0_i32_0 : i32, i32
  }
  func.func @transform_2(%arg0: i32) -> (i32, i32, i32) {
    %c0_i32 = arith.constant 0 : i32
    %c0_i32_0 = arith.constant 0 : i32
    %c0_i32_1 = arith.constant 0 : i32
    return %arg0, %c0_i32, %c0_i32_0 : i32, i32, i32
  }
  func.func @transform_3(%arg0: i32) -> (i32, i32, i32) {
    %c0_i32 = arith.constant 0 : i32
    %c0_i32_0 = arith.constant 0 : i32
    %c0_i32_1 = arith.constant 0 : i32
    return %arg0, %c0_i32, %c0_i32_0 : i32, i32, i32
  }
  func.func @transform_4(%arg0: i32) -> (i32, i32, i32) {
    %c0_i32 = arith.constant 0 : i32
    %c0_i32_0 = arith.constant 0 : i32
    %c0_i32_1 = arith.constant 0 : i32
    return %arg0, %c0_i32, %c0_i32_0 : i32, i32, i32
  }
}

module attributes {stable_mosaic.version = 11 : i64} {
  func.func @_bn_relu_conv_kernel(%arg0: i32, %arg1: memref<1x8x256xf32, #tpu.memory_space<vmem>>, %arg2: memref<8x1xf32, #tpu.memory_space<vmem>>, %arg3: memref<8x1xf32, #tpu.memory_space<vmem>>, %arg4: memref<8x72xf32, #tpu.memory_space<vmem>>, %arg5: memref<1x8x256xf32, #tpu.memory_space<vmem>>, %arg6: memref<1x8x1xf32, #tpu.memory_space<vmem>>, %arg7: memref<1x8x1xf32, #tpu.memory_space<vmem>>, %arg8: memref<8x512xf32, #tpu.memory_space<vmem>>) attributes {dimension_semantics = [#tpu.dimension_semantics<parallel>], iteration_bounds = array<i64: 2>, scalar_prefetch = 0 : i64, scratch_operands = 1 : i64, tpu.core_type = #tpu.core_type<tc>, window_params = [{transform_indices = @transform_0, window_bounds = array<i64: 1, 8, 256>}, {pipeline_mode = #tpu.pipeline_mode<synchronous>, transform_indices = @transform_1, window_bounds = array<i64: 8, 1>}, {pipeline_mode = #tpu.pipeline_mode<synchronous>, transform_indices = @transform_2, window_bounds = array<i64: 8, 1>}, {pipeline_mode = #tpu.pipeline_mode<synchronous>, transform_indices = @transform_3, window_bounds = array<i64: 8, 72>}, {transform_indices = @transform_4, window_bounds = array<i64: 1, 8, 256>}, {transform_indices = @transform_5, window_bounds = array<i64: 1, 8, 1>}, {transform_indices = @transform_6, window_bounds = array<i64: 1, 8, 1>}]} {
    %c0 = arith.constant 0 : index
    %c0_0 = arith.constant 0 : index
    %c0_1 = arith.constant 0 : index
    %0 = vector.load %arg1[%c0, %c0_0, %c0_1] : memref<1x8x256xf32, #tpu.memory_space<vmem>>, vector<1x8x256xf32>
    %1 = vector.shape_cast %0 : vector<1x8x256xf32> to vector<8x256xf32>
    %c0_2 = arith.constant 0 : index
    %c0_3 = arith.constant 0 : index
    %2 = vector.load %arg2[%c0_2, %c0_3] : memref<8x1xf32, #tpu.memory_space<vmem>>, vector<8x1xf32>
    %3 = vector.broadcast %2 : vector<8x1xf32> to vector<8x256xf32>
    %4 = arith.mulf %1, %3 : vector<8x256xf32>
    %c0_4 = arith.constant 0 : index
    %c0_5 = arith.constant 0 : index
    %5 = vector.load %arg3[%c0_4, %c0_5] : memref<8x1xf32, #tpu.memory_space<vmem>>, vector<8x1xf32>
    %6 = vector.broadcast %5 : vector<8x1xf32> to vector<8x256xf32>
    %7 = arith.addf %4, %6 : vector<8x256xf32>
    %cst = arith.constant 0.000000e+00 : f32
    %8 = vector.broadcast %cst : f32 to vector<8x256xf32>
    %9 = arith.maximumf %7, %8 : vector<8x256xf32>
    %cst_6 = arith.constant 0.000000e+00 : f32
    %10 = vector.broadcast %cst_6 : f32 to vector<8x128xf32>
    %c0_7 = arith.constant 0 : index
    %c0_8 = arith.constant 0 : index
    %11 = vector.load %arg8[%c0_7, %c0_8] : memref<8x512xf32, #tpu.memory_space<vmem>>, vector<8x128xf32>
    tpu.vector_store %arg8[%c0_7, %c0_8], %10 {strides = array<i32>} : memref<8x512xf32, #tpu.memory_space<vmem>>, vector<8x128xf32>,
    %c0_9 = arith.constant 0 : index
    %c128 = arith.constant 128 : index
    %12 = vector.load %arg8[%c0_9, %c128] : memref<8x512xf32, #tpu.memory_space<vmem>>, vector<8x256xf32>
    tpu.vector_store %arg8[%c0_9, %c128], %9 {strides = array<i32>} : memref<8x512xf32, #tpu.memory_space<vmem>>, vector<8x256xf32>,
    %c0_10 = arith.constant 0 : index
    %c384 = arith.constant 384 : index
    %13 = vector.load %arg8[%c0_10, %c384] : memref<8x512xf32, #tpu.memory_space<vmem>>, vector<8x128xf32>
    tpu.vector_store %arg8[%c0_10, %c384], %10 {strides = array<i32>} : memref<8x512xf32, #tpu.memory_space<vmem>>, vector<8x128xf32>,
    %14 = tpu.iota {dimensions = array<i32: 1>} : vector<1x256xi32>
    %c16_i32 = arith.constant 16 : i32
    %c0_i32 = arith.constant 0 : i32
    %15 = arith.cmpi eq, %c16_i32, %c0_i32 : i32
    %c1_i32 = arith.constant 1 : i32
    %16 = arith.select %15, %c1_i32, %c16_i32 : i32
    %17 = vector.broadcast %16 : i32 to vector<1x256xi32>
    %18 = arith.remsi %14, %17 : vector<1x256xi32>
    %c0_i32_11 = arith.constant 0 : i32
    %19 = vector.broadcast %c0_i32_11 : i32 to vector<1x256xi32>
    %20 = arith.cmpi ne, %18, %19 : vector<1x256xi32>
    %c0_i32_12 = arith.constant 0 : i32
    %21 = vector.broadcast %c0_i32_12 : i32 to vector<1x256xi32>
    %22 = arith.cmpi slt, %18, %21 : vector<1x256xi32>
    %c0_i32_13 = arith.constant 0 : i32
    %23 = arith.cmpi slt, %16, %c0_i32_13 : i32
    %24 = vector.broadcast %23 : i1 to vector<1x256xi1>
    %25 = vector.broadcast %24 : vector<1x256xi1> to vector<1x256xi1>
    %26 = arith.xori %22, %25 : vector<1x256xi1>
    %27 = arith.andi %26, %20 : vector<1x256xi1>
    %28 = vector.broadcast %16 : i32 to vector<1x256xi32>
    %29 = arith.addi %18, %28 : vector<1x256xi32>
    %30 = arith.select %27, %29, %18 : vector<1x256xi1>, vector<1x256xi32>
    %c0_14 = arith.constant 0 : index
    %c111 = arith.constant 111 : index
    %31 = vector.load %arg8[%c0_14, %c111] : memref<8x512xf32, #tpu.memory_space<vmem>>, vector<8x256xf32>
    %c-1_i32 = arith.constant -1 : i32
    %32 = vector.broadcast %c-1_i32 : i32 to vector<1x256xi32>
    %33 = arith.addi %30, %32 : vector<1x256xi32>
    %c0_i32_15 = arith.constant 0 : i32
    %34 = vector.broadcast %c0_i32_15 : i32 to vector<1x256xi32>
    %35 = arith.cmpi sge, %33, %34 : vector<1x256xi32>
    %c-1_i32_16 = arith.constant -1 : i32
    %36 = vector.broadcast %c-1_i32_16 : i32 to vector<1x256xi32>
    %37 = arith.addi %30, %36 : vector<1x256xi32>
    %c16_i32_17 = arith.constant 16 : i32
    %38 = vector.broadcast %c16_i32_17 : i32 to vector<1x256xi32>
    %39 = arith.cmpi slt, %37, %38 : vector<1x256xi32>
    %40 = arith.andi %35, %39 : vector<1x256xi1>
    %cst_18 = arith.constant 0.000000e+00 : f32
    %41 = vector.shape_cast %40 : vector<1x256xi1> to vector<1x256xi1>
    %42 = vector.broadcast %41 : vector<1x256xi1> to vector<8x256xi1>
    %43 = vector.broadcast %cst_18 : f32 to vector<8x256xf32>
    %44 = arith.select %42, %31, %43 : vector<8x256xi1>, vector<8x256xf32>
    %c0_19 = arith.constant 0 : index
    %c112 = arith.constant 112 : index
    %45 = vector.load %arg8[%c0_19, %c112] : memref<8x512xf32, #tpu.memory_space<vmem>>, vector<8x256xf32>
    %c0_20 = arith.constant 0 : index
    %c113 = arith.constant 113 : index
    %46 = vector.load %arg8[%c0_20, %c113] : memref<8x512xf32, #tpu.memory_space<vmem>>, vector<8x256xf32>
    %c1_i32_21 = arith.constant 1 : i32
    %47 = vector.broadcast %c1_i32_21 : i32 to vector<1x256xi32>
    %48 = arith.addi %30, %47 : vector<1x256xi32>
    %c0_i32_22 = arith.constant 0 : i32
    %49 = vector.broadcast %c0_i32_22 : i32 to vector<1x256xi32>
    %50 = arith.cmpi sge, %48, %49 : vector<1x256xi32>
    %c1_i32_23 = arith.constant 1 : i32
    %51 = vector.broadcast %c1_i32_23 : i32 to vector<1x256xi32>
    %52 = arith.addi %30, %51 : vector<1x256xi32>
    %c16_i32_24 = arith.constant 16 : i32
    %53 = vector.broadcast %c16_i32_24 : i32 to vector<1x256xi32>
    %54 = arith.cmpi slt, %52, %53 : vector<1x256xi32>
    %55 = arith.andi %50, %54 : vector<1x256xi1>
    %cst_25 = arith.constant 0.000000e+00 : f32
    %56 = vector.shape_cast %55 : vector<1x256xi1> to vector<1x256xi1>
    %57 = vector.broadcast %56 : vector<1x256xi1> to vector<8x256xi1>
    %58 = vector.broadcast %cst_25 : f32 to vector<8x256xf32>
    %59 = arith.select %57, %46, %58 : vector<8x256xi1>, vector<8x256xf32>
    %c0_26 = arith.constant 0 : index
    %c127 = arith.constant 127 : index
    %60 = vector.load %arg8[%c0_26, %c127] : memref<8x512xf32, #tpu.memory_space<vmem>>, vector<8x256xf32>
    %c-1_i32_27 = arith.constant -1 : i32
    %61 = vector.broadcast %c-1_i32_27 : i32 to vector<1x256xi32>
    %62 = arith.addi %30, %61 : vector<1x256xi32>
    %c0_i32_28 = arith.constant 0 : i32
    %63 = vector.broadcast %c0_i32_28 : i32 to vector<1x256xi32>
    %64 = arith.cmpi sge, %62, %63 : vector<1x256xi32>
    %c-1_i32_29 = arith.constant -1 : i32
    %65 = vector.broadcast %c-1_i32_29 : i32 to vector<1x256xi32>
    %66 = arith.addi %30, %65 : vector<1x256xi32>
    %c16_i32_30 = arith.constant 16 : i32
    %67 = vector.broadcast %c16_i32_30 : i32 to vector<1x256xi32>
    %68 = arith.cmpi slt, %66, %67 : vector<1x256xi32>
    %69 = arith.andi %64, %68 : vector<1x256xi1>
    %cst_31 = arith.constant 0.000000e+00 : f32
    %70 = vector.shape_cast %69 : vector<1x256xi1> to vector<1x256xi1>
    %71 = vector.broadcast %70 : vector<1x256xi1> to vector<8x256xi1>
    %72 = vector.broadcast %cst_31 : f32 to vector<8x256xf32>
    %73 = arith.select %71, %60, %72 : vector<8x256xi1>, vector<8x256xf32>
    %c0_32 = arith.constant 0 : index
    %c128_33 = arith.constant 128 : index
    %74 = vector.load %arg8[%c0_32, %c128_33] : memref<8x512xf32, #tpu.memory_space<vmem>>, vector<8x256xf32>
    %c0_34 = arith.constant 0 : index
    %c129 = arith.constant 129 : index
    %75 = vector.load %arg8[%c0_34, %c129] : memref<8x512xf32, #tpu.memory_space<vmem>>, vector<8x256xf32>
    %c1_i32_35 = arith.constant 1 : i32
    %76 = vector.broadcast %c1_i32_35 : i32 to vector<1x256xi32>
    %77 = arith.addi %30, %76 : vector<1x256xi32>
    %c0_i32_36 = arith.constant 0 : i32
    %78 = vector.broadcast %c0_i32_36 : i32 to vector<1x256xi32>
    %79 = arith.cmpi sge, %77, %78 : vector<1x256xi32>
    %c1_i32_37 = arith.constant 1 : i32
    %80 = vector.broadcast %c1_i32_37 : i32 to vector<1x256xi32>
    %81 = arith.addi %30, %80 : vector<1x256xi32>
    %c16_i32_38 = arith.constant 16 : i32
    %82 = vector.broadcast %c16_i32_38 : i32 to vector<1x256xi32>
    %83 = arith.cmpi slt, %81, %82 : vector<1x256xi32>
    %84 = arith.andi %79, %83 : vector<1x256xi1>
    %cst_39 = arith.constant 0.000000e+00 : f32
    %85 = vector.shape_cast %84 : vector<1x256xi1> to vector<1x256xi1>
    %86 = vector.broadcast %85 : vector<1x256xi1> to vector<8x256xi1>
    %87 = vector.broadcast %cst_39 : f32 to vector<8x256xf32>
    %88 = arith.select %86, %75, %87 : vector<8x256xi1>, vector<8x256xf32>
    %c0_40 = arith.constant 0 : index
    %c143 = arith.constant 143 : index
    %89 = vector.load %arg8[%c0_40, %c143] : memref<8x512xf32, #tpu.memory_space<vmem>>, vector<8x256xf32>
    %c-1_i32_41 = arith.constant -1 : i32
    %90 = vector.broadcast %c-1_i32_41 : i32 to vector<1x256xi32>
    %91 = arith.addi %30, %90 : vector<1x256xi32>
    %c0_i32_42 = arith.constant 0 : i32
    %92 = vector.broadcast %c0_i32_42 : i32 to vector<1x256xi32>
    %93 = arith.cmpi sge, %91, %92 : vector<1x256xi32>
    %c-1_i32_43 = arith.constant -1 : i32
    %94 = vector.broadcast %c-1_i32_43 : i32 to vector<1x256xi32>
    %95 = arith.addi %30, %94 : vector<1x256xi32>
    %c16_i32_44 = arith.constant 16 : i32
    %96 = vector.broadcast %c16_i32_44 : i32 to vector<1x256xi32>
    %97 = arith.cmpi slt, %95, %96 : vector<1x256xi32>
    %98 = arith.andi %93, %97 : vector<1x256xi1>
    %cst_45 = arith.constant 0.000000e+00 : f32
    %99 = vector.shape_cast %98 : vector<1x256xi1> to vector<1x256xi1>
    %100 = vector.broadcast %99 : vector<1x256xi1> to vector<8x256xi1>
    %101 = vector.broadcast %cst_45 : f32 to vector<8x256xf32>
    %102 = arith.select %100, %89, %101 : vector<8x256xi1>, vector<8x256xf32>
    %c0_46 = arith.constant 0 : index
    %c144 = arith.constant 144 : index
    %103 = vector.load %arg8[%c0_46, %c144] : memref<8x512xf32, #tpu.memory_space<vmem>>, vector<8x256xf32>
    %c0_47 = arith.constant 0 : index
    %c145 = arith.constant 145 : index
    %104 = vector.load %arg8[%c0_47, %c145] : memref<8x512xf32, #tpu.memory_space<vmem>>, vector<8x256xf32>
    %c1_i32_48 = arith.constant 1 : i32
    %105 = vector.broadcast %c1_i32_48 : i32 to vector<1x256xi32>
    %106 = arith.addi %30, %105 : vector<1x256xi32>
    %c0_i32_49 = arith.constant 0 : i32
    %107 = vector.broadcast %c0_i32_49 : i32 to vector<1x256xi32>
    %108 = arith.cmpi sge, %106, %107 : vector<1x256xi32>
    %c1_i32_50 = arith.constant 1 : i32
    %109 = vector.broadcast %c1_i32_50 : i32 to vector<1x256xi32>
    %110 = arith.addi %30, %109 : vector<1x256xi32>
    %c16_i32_51 = arith.constant 16 : i32
    %111 = vector.broadcast %c16_i32_51 : i32 to vector<1x256xi32>
    %112 = arith.cmpi slt, %110, %111 : vector<1x256xi32>
    %113 = arith.andi %108, %112 : vector<1x256xi1>
    %cst_52 = arith.constant 0.000000e+00 : f32
    %114 = vector.shape_cast %113 : vector<1x256xi1> to vector<1x256xi1>
    %115 = vector.broadcast %114 : vector<1x256xi1> to vector<8x256xi1>
    %116 = vector.broadcast %cst_52 : f32 to vector<8x256xf32>
    %117 = arith.select %115, %104, %116 : vector<8x256xi1>, vector<8x256xf32>
    %118 = tpu.concatenate %44, %45, %59, %73, %74, %88, %102, %103, %117 in 0 : vector<8x256xf32>, vector<8x256xf32>, vector<8x256xf32>, vector<8x256xf32>, vector<8x256xf32>, vector<8x256xf32>, vector<8x256xf32>, vector<8x256xf32>, vector<8x256xf32> -> vector<72x256xf32>
    %c0_53 = arith.constant 0 : index
    %c0_54 = arith.constant 0 : index
    %119 = vector.load %arg4[%c0_53, %c0_54] : memref<8x72xf32, #tpu.memory_space<vmem>>, vector<8x72xf32>
    %cst_55 = arith.constant dense<0.000000e+00> : vector<8x256xf32>
    %120 = tpu.matmul %119, %118, %cst_55 {dimension_numbers = #tpu.dot_dimension_numbers<[1], [0], [0], [1], [0, 0, 1, 1], [], []>} : vector<8x72xf32>, vector<72x256xf32>, vector<8x256xf32> -> vector<8x256xf32>
    %c0_56 = arith.constant 0 : index
    %c0_57 = arith.constant 0 : index
    %c0_58 = arith.constant 0 : index
    %121 = vector.load %arg5[%c0_56, %c0_57, %c0_58] : memref<1x8x256xf32, #tpu.memory_space<vmem>>, vector<1x8x256xf32>
    %122 = vector.shape_cast %121 : vector<1x8x256xf32> to vector<8x256xf32>
    %123 = vector.shape_cast %120 : vector<8x256xf32> to vector<1x8x256xf32>
    tpu.vector_store %arg5[%c0_56, %c0_57, %c0_58], %123 {strides = array<i32>} : memref<1x8x256xf32, #tpu.memory_space<vmem>>, vector<1x8x256xf32>,
    %cst_59 = arith.constant dense<0.000000e+00> : vector<8xf32>
    %124 = vector.multi_reduction <add>, %120, %cst_59 [1] : vector<8x256xf32> to vector<8xf32>
    %125 = vector.shape_cast %124 : vector<8xf32> to vector<8x1xf32>
    %c0_60 = arith.constant 0 : index
    %c0_61 = arith.constant 0 : index
    %c0_62 = arith.constant 0 : index
    %126 = vector.load %arg6[%c0_60, %c0_61, %c0_62] : memref<1x8x1xf32, #tpu.memory_space<vmem>>, vector<1x8x1xf32>
    %127 = vector.shape_cast %126 : vector<1x8x1xf32> to vector<8x1xf32>
    %128 = vector.shape_cast %125 : vector<8x1xf32> to vector<1x8x1xf32>
    tpu.vector_store %arg6[%c0_60, %c0_61, %c0_62], %128 {strides = array<i32>} : memref<1x8x1xf32, #tpu.memory_space<vmem>>, vector<1x8x1xf32>,
    %129 = arith.mulf %120, %120 : vector<8x256xf32>
    %cst_63 = arith.constant dense<0.000000e+00> : vector<8xf32>
    %130 = vector.multi_reduction <add>, %129, %cst_63 [1] : vector<8x256xf32> to vector<8xf32>
    %131 = vector.shape_cast %130 : vector<8xf32> to vector<8x1xf32>
    %c0_64 = arith.constant 0 : index
    %c0_65 = arith.constant 0 : index
    %c0_66 = arith.constant 0 : index
    %132 = vector.load %arg7[%c0_64, %c0_65, %c0_66] : memref<1x8x1xf32, #tpu.memory_space<vmem>>, vector<1x8x1xf32>
    %133 = vector.shape_cast %132 : vector<1x8x1xf32> to vector<8x1xf32>
    %134 = vector.shape_cast %131 : vector<8x1xf32> to vector<1x8x1xf32>
    tpu.vector_store %arg7[%c0_64, %c0_65, %c0_66], %134 {strides = array<i32>} : memref<1x8x1xf32, #tpu.memory_space<vmem>>, vector<1x8x1xf32>,
    return
  }
  func.func @transform_0(%arg0: i32) -> (i32, i32, i32) {
    %c0_i32 = arith.constant 0 : i32
    %c0_i32_0 = arith.constant 0 : i32
    %c0_i32_1 = arith.constant 0 : i32
    return %arg0, %c0_i32, %c0_i32_0 : i32, i32, i32
  }
  func.func @transform_1(%arg0: i32) -> (i32, i32) {
    %c0_i32 = arith.constant 0 : i32
    %c0_i32_0 = arith.constant 0 : i32
    %c0_i32_1 = arith.constant 0 : i32
    return %c0_i32, %c0_i32_0 : i32, i32
  }
  func.func @transform_2(%arg0: i32) -> (i32, i32) {
    %c0_i32 = arith.constant 0 : i32
    %c0_i32_0 = arith.constant 0 : i32
    %c0_i32_1 = arith.constant 0 : i32
    return %c0_i32, %c0_i32_0 : i32, i32
  }
  func.func @transform_3(%arg0: i32) -> (i32, i32) {
    %c0_i32 = arith.constant 0 : i32
    %c0_i32_0 = arith.constant 0 : i32
    %c0_i32_1 = arith.constant 0 : i32
    return %c0_i32, %c0_i32_0 : i32, i32
  }
  func.func @transform_4(%arg0: i32) -> (i32, i32, i32) {
    %c0_i32 = arith.constant 0 : i32
    %c0_i32_0 = arith.constant 0 : i32
    %c0_i32_1 = arith.constant 0 : i32
    return %arg0, %c0_i32, %c0_i32_0 : i32, i32, i32
  }
  func.func @transform_5(%arg0: i32) -> (i32, i32, i32) {
    %c0_i32 = arith.constant 0 : i32
    %c0_i32_0 = arith.constant 0 : i32
    %c0_i32_1 = arith.constant 0 : i32
    return %arg0, %c0_i32, %c0_i32_0 : i32, i32, i32
  }
  func.func @transform_6(%arg0: i32) -> (i32, i32, i32) {
    %c0_i32 = arith.constant 0 : i32
    %c0_i32_0 = arith.constant 0 : i32
    %c0_i32_1 = arith.constant 0 : i32
    return %arg0, %c0_i32, %c0_i32_0 : i32, i32, i32
  }
}

</mosaic_0001>

<bundles_post_ra>
// kernel: sep_conv_forward.3
= control target key start
LH: loop header
LB: loop body
LE: loop exit
PB: predicated region body
PF: predicated region fallthrough
CT: control target
= control target key end

     0   :  { %s826_s21 = smov 0   ;;  %s932_s0 = inlined_call_operand.vmem [shape: f32[2,8,256], index: 0, kind: input, shape index: {}]   ;;  %s933_s1 = inlined_call_operand.vmem [shape: f32[8,1], index: 1, kind: input, shape index: {}]   ;;  %s934_s2 = inlined_call_operand.vmem [shape: f32[8,1], index: 2, kind: input, shape index: {}]   ;;  %s935_s3 = inlined_call_operand.vmem [shape: f32[8,72], index: 3, kind: input, shape index: {}]   ;;  %s936_s4 = inlined_call_operand.vmem [shape: f32[2,8,256], index: 4, kind: output, shape index: {0}]   ;;  %s937_s5 = inlined_call_operand.vmem [shape: f32[2,8,1], index: 5, kind: output, shape index: {1}]   ;;  %s938_s6 = inlined_call_operand.vmem [shape: f32[2,8,1], index: 6, kind: output, shape index: {2}]  }
   0x1 LB: > { %s665_s22 = sadd.s32 4294967295, %s778_s21   ;;  %p669_p0 = scmp.ge.s32.totalorder %s778_s21, 1  ;;  %s778_s21 = sphi %s826_s21, %s17_s21  }
   0x2   : > { %p217_p1 = scmp.lt.s32.totalorder %s778_s21, 3 }
   0x4   : > { %p218_p2 = pnand %p669_p0, %p217_p1 }
   0x5   : > { %v275_v0 = vld [vmem:[%s933_s1] sm:$0xff] (!%p218_p2)  ;;  %v780_v1 = vmov (!%p218_p2), 0   ;;  %v781_v3 = vmov (!%p218_p2), 0.0   ;;  %s782_s27 = smov (!%p218_p2), 16   ;;  %s783_s28 = smov (!%p218_p2), 1   ;;  %v297_v16 = vlaneseq (!%p218_p2)  ;;  %vm373_vm0 = vcmask (!%p218_p2), 121856  }
   0x6   : > { %221 = sbr.rel (%p218_p2) target bundleno = 648 (0x288), region = 36  ;;  %736 = vset.pattern.permute.xlu0 (!%p218_p2), %v780_v1  ;;  %v283_v2 = vld [vmem:[%s934_s2] sm:$0xff] (!%p218_p2)  ;;  %529 = vmatprep.mubr.f32.mxu0 (!%p218_p2), %v781_v3  ;;  %s784_s29 = smov (!%p218_p2), 17   ;;  %vm348_vm1 = vcmask (!%p218_p2), 138240   ;;  %vm444_vm2 = vcmask (!%p218_p2), 130048   ;;  %vm405_vm4 = vcmask (!%p218_p2), 1039360  }
   0x7   : > { %278 = vperm.xlu0 (!%p218_p2), %736, %v275_v0   ;;  %438 = vrot.lane.b32.xlu1 (!%p218_p2), %v781_v3, %s782_s27  ;;  %s785_s30 = smov (!%p218_p2), 15   ;;  %p255_p3 = scmp.lt.s32.totalorder (!%p218_p2), %s665_s22, 1  ;;  %v298_v19 = vand.u32 (!%p218_p2), 127, %v297_v16  ;;  %vm790_vm6 = vmmov (!%p218_p2), 1   ;;  %vm386_vm8 = vcmask (!%p218_p2), 7168   ;;  %vm418_vm15 = vcmask (!%p218_p2), 924672  }
   0x8   : > { %s786_s11 = smov (!%p218_p2), 127   ;;  %s787_s12 = smov (!%p218_p2), 113  }
   0x9   : > { %s788_s13 = smov (!%p218_p2), 111   ;;  %s789_s14 = smov (!%p218_p2), 112   ;;  %v299_v20 = vadd.s32 (!%p218_p2), 128, %v298_v19  ;;  %v304_v24 = vand.u32 (!%p218_p2), 15, %v298_v19 }
   0xb   : > { %286 = vperm.xlu0 (!%p218_p2), %736, %v283_v2   ;;  %380 = vrot.lane.b32.xlu1 (!%p218_p2), %v781_v3, %s783_s28  ;;  %v311_v23 = vand.u32 (!%p218_p2), 15, %v299_v20  ;;  %v327_v28 = vadd.s32 (!%p218_p2), 4294967295, %v304_v24  ;;  %v862_v36 = vadd.s32 (!%p218_p2), 1, %v304_v24 }
   0xd   : > { %s944_s22 = smov (!%p255_p3, %s665_s22), 1  ;;  %v328_v27 = vadd.s32 4294967295, %v311_v23  ;;  %v860_v33 = vadd.s32 1, %v311_v23  ;;  %vm329_vm5 = vcmp.ge.s32.totalorder %v327_v28, 0  ;;  %vm359_vm11 = vcmp.lt.s32.totalorder %v862_v36, 16 }
   0xe   : > { %s691_s7 = sshll.u32 %s944_s22, 4  ;;  %vm875_vm10 = vmpackc.low %vm790_vm6, %vm329_vm5  ;;  %s674_s20 = sshll.u32 %s944_s22, 3 }
   0xf   : > { %342 = vrot.lane.b32.xlu0 %v781_v3, %s784_s29  ;;  %s259_s10 = scalar_lea.vmem %s932_s0, %s691_s7  ;;  %vm330_vm3 = vcmp.ge.s32.totalorder %v328_v27, 0  ;;  %vm360_vm9 = vcmp.lt.s32.totalorder %v860_v33, 16  ;;  %vm703_vm13 = vmpackc.low %vm329_vm5, %vm359_vm11  ;;  %s264_s19 = scalar_lea.vmem %s936_s4, %s691_s7 }
  0x10   : > { %v273_v5 = vld [vmem:[%s259_s10] sm:$0xff]  ;;  %v274_v6 = vld [vmem:[%s259_s10 + $0x8] sm:$0xff]  ;;  %vm867_vm7 = vmpackc.low %vm790_vm6, %vm330_vm3  ;;  %s268_s25 = scalar_lea.vmem %s937_s5, %s674_s20 }
  0x11   : > { %vm700_vm12 = vmpackc.low %vm330_vm3, %vm360_vm9  ;;  %vm461_vm3 = vcmask 588800  }
  0x12   : > { %vm706_vm14 = vmpackc.low %vm360_vm9, %vm790_vm6 }
  0x13   : > { %367 = vrot.lane.b32.xlu0 %v781_v3, %s785_s30 }
  0x79   : > { %v439_v17 = vpop.permute.xlu1 %438 }
  0x7d   : > { %v381_v21 = vpop.permute.xlu1 %380 }
  0x86   : > { %v279_v4 = vpop.permute.xlu0 %278 }
  0x87   : > { %v281_v7 = vmul.f32 %v279_v4, %v273_v5  ;;  %v282_v8 = vmul.f32 %v279_v4, %v274_v6 }
  0x8a   : > { %v287_v9 = vpop.permute.xlu0 %286 }
  0x8b   : > { %v289_v10 = vadd.f32 %v287_v9, %v281_v7  ;;  %v290_v11 = vadd.f32 %v287_v9, %v282_v8 }
  0x8d   : > { %v848_v12 = vmax.f32 %v289_v10, 0.0  ;;  %v850_v13 = vmax.f32 %v290_v11, 0.0 }
  0x8e   : > { %v343_v18 = vpop.permute.xlu0 %342 }
  0x8f   : > { %v747_v14 = vpack.i.bf16 %v850_v13, %v848_v12  ;;  %v757_v15 = vpack.i.bf16 %v781_v3, %v850_v13 }
  0x91   : > { %748 = vrot.lane.b32.xlu0 %v747_v14, %s785_s30  ;;  %738 = vrot.lane.b32.xlu1 %v747_v14, %s784_s29 }
  0x92   : > { %v368_v22 = vpop.permute.xlu0 %367 }
  0x95   : > { %758 = vrot.lane.b32.xlu0 %v757_v15, %s786_s11  ;;  %743 = vrot.lane.b32.xlu1 %v747_v14, %s782_s27 }
  0x99   : > { %763 = vrot.lane.b32.xlu0 %v757_v15, %s787_s12  ;;  %753 = vrot.lane.b32.xlu1 %v747_v14, %s783_s28  ;;  %s272_s28 = scalar_lea.vmem %s938_s6, %s674_s20 }
  0x9d   : > { %412 = vrot.lane.b32.xlu0 %v848_v12, %s787_s12  ;;  %399 = vrot.lane.b32.xlu1 %v848_v12, %s786_s11 }
  0xa1   : > { %427 = vrot.lane.b32.xlu0 %v850_v13, %s788_s13  ;;  %768 = vrot.lane.b32.xlu1 %v757_v15, %s789_s14 }
  0xa5   : > { %425 = vrot.lane.b32.xlu0 %v848_v12, %s788_s13  ;;  %449 = vrot.lane.b32.xlu1 %v848_v12, %s789_s14 }
  0xa9   : > { %429 = vrot.lane.b32.xlu1 %v781_v3, %s788_s13 }
 0x103   : > { %v749_v25 = vpop.permute.xlu0 %748  ;;  %v739_v26 = vpop.permute.xlu1 %738 }
 0x104   : > { %v741_v29 = vunpack.i.h.bf16 %v739_v26  ;;  %v740_v30 = vunpack.i.l.bf16 %v739_v26  ;;  %v751_v37 = vunpack.i.h.bf16 %v749_v25  ;;  %v750_v38 = vunpack.i.l.bf16 %v749_v25 }
 0x106   : > { %v350_v39 = vsel %vm348_vm1, %v740_v30, %v741_v29  ;;  %v349_v40 = vsel %vm348_vm1, %v343_v18, %v740_v30  ;;  %v374_v53 = vsel %vm373_vm0, %v368_v22, %v750_v38  ;;  %v375_v54 = vsel %vm373_vm0, %v750_v38, %v751_v37  ;;  %vm709_vm0 = vmpackc.low %vm359_vm11, %vm790_vm6 }
 0x107   : > { %v759_v31 = vpop.permute.xlu0 %758  ;;  %v744_v32 = vpop.permute.xlu1 %743  ;;  %vm455_vm1 = vcmask 916480  }
 0x108   : > { %v746_v34 = vunpack.i.h.bf16 %v744_v32  ;;  %v745_v35 = vunpack.i.l.bf16 %v744_v32  ;;  %v761_v41 = vunpack.i.h.bf16 %v759_v31  ;;  %v760_v42 = vunpack.i.l.bf16 %v759_v31 }
 0x10a   : > { %v446_v43 = vsel %vm444_vm2, %v745_v35, %v746_v34  ;;  %v445_v45 = vsel %vm444_vm2, %v439_v17, %v745_v35  ;;  %v407_v57 = vsel %vm405_vm4, %v760_v42, %v761_v41  ;;  %vm431_vm2 = vcmask 908288   ;;  %v460_v17 = vld [vmem:[%s935_s3] sm:$0xff] }
 0x10b   : > { %v764_v46 = vpop.permute.xlu0 %763  ;;  %v754_v47 = vpop.permute.xlu1 %753  ;;  %v693_v48 = vpack.c.bf16 %v446_v43, %v350_v39  ;;  %v696_v49 = vpack.c.bf16 %v445_v45, %v349_v40  ;;  %v705_v62 = vpack.c.bf16 %v407_v57, %v850_v13 }
 0x10c   : > { %v756_v51 = vunpack.i.h.bf16 %v754_v47  ;;  %v755_v52 = vunpack.i.l.bf16 %v754_v47  ;;  %v766_v0 = vunpack.i.h.bf16 %v764_v46  ;;  %v765_v1 = vunpack.i.l.bf16 %v764_v46 }
 0x10d   : > { %695 = vmatprep.subr.msk.bf16.mxu0 %vm867_vm7, %v693_v48 }
 0x10e   : > { %v387_v55 = vsel %vm386_vm8, %v381_v21, %v755_v52  ;;  %v388_v56 = vsel %vm386_vm8, %v755_v52, %v756_v51  ;;  %698 = vmatpush1.bf16.msk.msra.mxu0 %vm875_vm10, %v696_v49  ;;  %v420_v7 = vsel %vm418_vm15, %v765_v1, %v766_v0 }
 0x10f   : > { %v699_v58 = vpack.c.bf16 %v388_v56, %v375_v54  ;;  %v702_v59 = vpack.c.bf16 %v387_v55, %v374_v53  ;;  %v413_v60 = vpop.permute.xlu0 %412  ;;  %v400_v61 = vpop.permute.xlu1 %399 }
 0x110   : > { %v406_v63 = vsel %vm405_vm4, %v400_v61, %v760_v42  ;;  %v419_v11 = vsel %vm418_vm15, %v413_v60, %v765_v1 }
 0x111   : > { %701 = vmatprep.subr.msk.bf16.mxu0 %vm700_vm12, %v699_v58  ;;  %v708_v3 = vpack.c.bf16 %v406_v63, %v848_v12 }
 0x112   : > { %704 = vmatpush1.bf16.msk.msra.mxu0 %vm703_vm13, %v702_v59 }
 0x113   : > { %v769_v2 = vpop.permute.xlu1 %768  ;;  %707 = vmatprep.subr.msk.bf16.mxu0 %vm706_vm14, %v705_v62  ;;  %v428_v6 = vpop.permute.xlu0 %427 }
 0x114   : > { %v771_v4 = vunpack.i.h.bf16 %v769_v2  ;;  %v770_v5 = vunpack.i.l.bf16 %v769_v2 }
 0x116   : > { %710 = vmatpush1.bf16.msk.msra.mxu0 %vm709_vm0, %v708_v3  ;;  %v457_v8 = vsel %vm455_vm1, %v770_v5, %v771_v4 }
 0x117   : > { %v450_v9 = vpop.permute.xlu1 %449  ;;  %v711_v10 = vpack.c.bf16 %v457_v8, %v420_v7  ;;  %v426_v15 = vpop.permute.xlu0 %425 }
 0x118   : > { %v456_v13 = vsel %vm455_vm1, %v450_v9, %v770_v5  ;;  %v432_v18 = vsel %vm431_vm2, %v426_v15, %v428_v6 }
 0x119   : > { %v714_v14 = vpack.c.bf16 %v456_v13, %v419_v11  ;;  %713 = vmatprep.subr.msk.bf16.mxu0 %vm867_vm7, %v711_v10 }
 0x11b   : > { %v430_v16 = vpop.permute.xlu1 %429  ;;  %716 = vmatpush1.bf16.msk.msra.mxu0 %vm875_vm10, %v714_v14 }
 0x11c   : > { %v433_v12 = vsel %vm431_vm2, %v428_v6, %v430_v16 }
 0x11d   : > { %686 = vmatprep.subr.msk.mxu0 %vm360_vm9, %v433_v12 }
 0x11f   : > { %687 = vmatpush1.msk.msra.mxu0 %vm359_vm11, %v432_v18 }
 0x120   : > { %688 = vmatmul.mubr.msk.f32.vlgmr.msra.gmra.mrb[0].mxu0 %vm461_vm3, %v460_v17 }
 0x1f3   : > { %v531_v19 = vpop.f32.mrb[0].mxu0 }
 0x1f4   : > { %v533_v20 = vpop.f32.mrb[1].mxu0  ;;  %536 = vst [vmem:[%s264_s19] sm:$0xff] %v531_v19  ;;  %v542_v21 = vmul.f32 %v531_v19, %v531_v19 }
 0x1f5   : > { %537 = vst [vmem:[%s264_s19 + $0x8] sm:$0xff] %v533_v20  ;;  %v543_v22 = vmul.f32 %v533_v20, %v533_v20  ;;  %v538_v23 = vadd.f32 %v533_v20, %v531_v19 }
 0x1f7   : > { %539 = vadd.xlane.f32.xlu1 %v538_v23  ;;  %v544_v24 = vadd.f32 %v543_v22, %v542_v21 }
 0x1f9   : > { %545 = vadd.xlane.f32.xlu0 %v544_v24 }
 0x284   : > { %v540_v25 = vpop.xlane.xlu1 %539 }
 0x285   : > { %541 = vst.msk [vmem:[%s268_s25] sm:$0xff] %vm386_vm8, %v540_v25 }
 0x286   : > { %v546_v26 = vpop.xlane.xlu0 %545 }
 0x287   : > { %547 = vst.msk [vmem:[%s272_s28] sm:$0xff] %vm386_vm8, %v546_v26 }
 0x288 PF: > { %s17_s21 = sadd.s32 1, %s778_s21  }
 0x289   : > { %p14_p4 = scmp.ge.s32.totalorder %s17_s21, 4  }
 0x28b   :  { %16 = sbr.rel (!%p14_p4) target bundleno = 1 (0x1), region = 90 }

// kernel: sep_conv_forward.2
= control target key start
LH: loop header
LB: loop body
LE: loop exit
PB: predicated region body
PF: predicated region fallthrough
CT: control target
= control target key end

     0   :  { %s703_s15 = smov 0   ;;  %s817_s0 = inlined_call_operand.vmem [shape: f32[2,8,256], index: 0, kind: input, shape index: {}]   ;;  %s818_s1 = inlined_call_operand.vmem [shape: f32[8,9], index: 1, kind: input, shape index: {}]   ;;  %s819_s2 = inlined_call_operand.vmem [shape: f32[2,8,256], index: 2, kind: output, shape index: {0}]   ;;  %s820_s3 = inlined_call_operand.vmem [shape: f32[2,8,1], index: 3, kind: output, shape index: {1}]   ;;  %s821_s4 = inlined_call_operand.vmem [shape: f32[2,8,1], index: 4, kind: output, shape index: {2}]  }
   0x1 LB: > { %s601_s16 = sadd.s32 4294967295, %s658_s15   ;;  %p605_p0 = scmp.ge.s32.totalorder %s658_s15, 1  ;;  %s658_s15 = sphi %s703_s15, %s15_s15  }
   0x2   : > { %p167_p1 = scmp.lt.s32.totalorder %s658_s15, 3 }
   0x4   : > { %p168_p2 = pnand %p605_p0, %p167_p1 }
   0x5   : > { %v257_v0 = vld [vmem:[%s818_s1] sm:$0xff] (!%p168_p2)  ;;  %v660_v1 = vmov (!%p168_p2), 1   ;;  %v661_v2 = vmov (!%p168_p2), 0   ;;  %p201_p3 = scmp.lt.s32.totalorder (!%p168_p2), %s601_s16, 1  ;;  %v662_v3 = vmov (!%p168_p2), 7   ;;  %v663_v4 = vmov (!%p168_p2), 2  }
   0x6   : > { %171 = sbr.rel (%p168_p2) target bundleno = 420 (0x1a4), region = 28  ;;  %642 = vset.pattern.permute.xlu0 (!%p168_p2), %v660_v1  ;;  %644 = vset.pattern.permute.xlu1 (!%p168_p2), %v661_v2  ;;  %v664_v7 = vmov (!%p168_p2), 3   ;;  %v665_v8 = vmov (!%p168_p2), 0.0   ;;  %s666_s23 = smov (!%p168_p2), 17   ;;  %v667_v11 = vmov (!%p168_p2), 5   ;;  %v668_v12 = vmov (!%p168_p2), 4  }
   0x7   : > { %296 = vperm.xlu0 (!%p168_p2), %642, %v257_v0   ;;  %288 = vperm.xlu1 (!%p168_p2), %644, %v257_v0   ;;  %s669_s24 = smov (!%p168_p2), 15   ;;  %v670_v13 = vmov (!%p168_p2), 6   ;;  %s671_s25 = smov (!%p168_p2), 1   ;;  %v672_v14 = vmov (!%p168_p2), 8   ;;  %v227_v37 = vlaneseq (!%p168_p2)  ;;  %vm279_vm0 = vcmask (!%p168_p2), 138240  }
   0x8   : > { %s673_s26 = smov (!%p168_p2), 127   ;;  %s674_s27 = smov (!%p168_p2), 113   ;;  %vm336_vm1 = vcmask (!%p168_p2), 121856   ;;  %vm357_vm3 = vcmask (!%p168_p2), 7168   ;;  %vm311_vm6 = vcmask (!%p168_p2), 130048   ;;  %vm392_vm8 = vcmask (!%p168_p2), 1039360  }
   0x9   : > { %s675_s28 = smov (!%p168_p2), 16   ;;  %s676_s29 = smov (!%p168_p2), 111   ;;  %v228_v40 = vand.u32 (!%p168_p2), 127, %v227_v37  ;;  %vm413_vm9 = vcmask (!%p168_p2), 924672   ;;  %vm457_vm10 = vcmask (!%p168_p2), 908288   ;;  %vm444_vm11 = vcmask (!%p168_p2), 916480  }
   0xa   : > { %s677_s30 = smov (!%p168_p2), 112  }
   0xb   : > { %643 = vset.pattern.permute.xlu0 (!%p168_p2), %v662_v3  ;;  %645 = vset.pattern.permute.xlu1 (!%p168_p2), %v663_v4  ;;  %v229_v43 = vadd.s32 (!%p168_p2), 128, %v228_v40  ;;  %v234_v44 = vand.u32 (!%p168_p2), 15, %v228_v40 }
   0xc   : > { %429 = vperm.xlu0 (!%p168_p2), %643, %v257_v0   ;;  %344 = vperm.xlu1 (!%p168_p2), %645, %v257_v0  }
   0xd   : > { %s823_s16 = smov (!%p201_p3, %s601_s16), 1  ;;  %v241_v45 = vand.u32 15, %v229_v43  ;;  %v258_v46 = vadd.s32 4294967295, %v234_v44  ;;  %v754_v49 = vadd.s32 1, %v234_v44 }
   0xe   : > { %s614_s19 = sshll.u32 %s823_s16, 4  ;;  %s610_s8 = sshll.u32 %s823_s16, 3 }
   0xf   : > { %s205_s22 = scalar_lea.vmem %s817_s0, %s614_s19  ;;  %v259_v50 = vadd.s32 4294967295, %v241_v45  ;;  %vm260_vm2 = vcmp.ge.s32.totalorder %v258_v46, 0  ;;  %v756_v52 = vadd.s32 1, %v241_v45  ;;  %vm322_vm4 = vcmp.lt.s32.totalorder %v754_v49, 16  ;;  %s210_s7 = scalar_lea.vmem %s819_s2, %s614_s19 }
  0x10   : > { %v220_v5 = vld [vmem:[%s205_s22 + $0x8] sm:$0xff]  ;;  %v219_v6 = vld [vmem:[%s205_s22] sm:$0xff]  ;;  %646 = vset.pattern.permute.xlu1 %v664_v7  ;;  %273 = vrot.lane.b32.xlu0 %v665_v8, %s666_s23  ;;  %s214_s11 = scalar_lea.vmem %s820_s3, %s610_s8  ;;  %s218_s14 = scalar_lea.vmem %s821_s4, %s610_s8 }
  0x11   : > { %v722_v9 = vmax.f32 %v220_v5, 0.0  ;;  %365 = vperm.xlu1 %646, %v257_v0   ;;  %v724_v10 = vmax.f32 %v219_v6, 0.0  ;;  %648 = vset.pattern.permute.xlu0 %v667_v11  ;;  %vm261_vm5 = vcmp.ge.s32.totalorder %v259_v50, 0  ;;  %vm323_vm7 = vcmp.lt.s32.totalorder %v756_v52, 16 }
  0x14   : > { %277 = vrot.lane.b32.xlu0 %v722_v9, %s666_s23 }
  0x15   : > { %275 = vrot.lane.b32.xlu1 %v724_v10, %s666_s23 }
  0x16   : > { %647 = vset.pattern.permute.xlu1 %v668_v12 }
  0x18   : > { %330 = vrot.lane.b32.xlu0 %v665_v8, %s669_s24 }
  0x19   : > { %373 = vperm.xlu1 %647, %v257_v0  }
  0x1c   : > { %334 = vrot.lane.b32.xlu0 %v722_v9, %s669_s24 }
  0x1d   : > { %332 = vrot.lane.b32.xlu1 %v724_v10, %s669_s24 }
  0x1e   : > { %649 = vset.pattern.permute.xlu1 %v670_v13 }
  0x20   : > { %400 = vperm.xlu0 %648, %v257_v0  }
  0x21   : > { %351 = vrot.lane.b32.xlu1 %v665_v8, %s671_s25 }
  0x24   : > { %355 = vrot.lane.b32.xlu0 %v722_v9, %s671_s25 }
  0x25   : > { %353 = vrot.lane.b32.xlu1 %v724_v10, %s671_s25  ;;  %651 = vset.pattern.permute.xlu0 %v672_v14 }
  0x28   : > { %386 = vrot.lane.b32.xlu0 %v724_v10, %s673_s26 }
  0x29   : > { %421 = vperm.xlu1 %649, %v257_v0  }
  0x2c   : > { %390 = vrot.lane.b32.xlu0 %v665_v8, %s673_s26 }
  0x2d   : > { %388 = vrot.lane.b32.xlu1 %v722_v9, %s673_s26 }
  0x2e   : > { %650 = vset.pattern.permute.xlu1 %v672_v14 }
  0x30   : > { %407 = vrot.lane.b32.xlu0 %v724_v10, %s674_s27 }
  0x31   : > { %465 = vperm.xlu1 %650, %v257_v0  }
  0x34   : > { %411 = vrot.lane.b32.xlu0 %v665_v8, %s674_s27 }
  0x35   : > { %409 = vrot.lane.b32.xlu1 %v722_v9, %s674_s27 }
  0x86   : > { %v297_v15 = vpop.permute.xlu0 %296  ;;  %v289_v23 = vpop.permute.xlu1 %288 }
  0x87   : > { %v299_v16 = vmul.f32 0.0, %v297_v15  ;;  %v300_v17 = vmul.f32 %v297_v15, %v724_v10  ;;  %v301_v18 = vmul.f32 %v297_v15, %v722_v9 }
  0x89   : > { %305 = vrot.lane.b32.xlu1 %v299_v16, %s675_s28  ;;  %307 = vrot.lane.b32.xlu0 %v300_v17, %s675_s28 }
  0x8b   : > { %v430_v19 = vpop.permute.xlu0 %429  ;;  %v742_v24 = vpop.permute.xlu1 %344 }
  0x8c   : > { %v432_v20 = vmul.f32 %v430_v19, %v724_v10  ;;  %v434_v21 = vmul.f32 0.0, %v430_v19  ;;  %v433_v22 = vmul.f32 %v430_v19, %v722_v9 }
  0x8d   : > { %309 = vrot.lane.b32.xlu1 %v301_v18, %s675_s28  ;;  %453 = vrot.lane.b32.xlu0 %v722_v9, %s676_s29 }
  0x8f   : > { %v274_v26 = vpop.permute.xlu0 %273 }
  0x90   : > { %v744_v25 = vpop.permute.xlu1 %365 }
  0x91   : > { %451 = vrot.lane.b32.xlu1 %v724_v10, %s676_s29  ;;  %438 = vrot.lane.b32.xlu0 %v432_v20, %s677_s30 }
  0x93   : > { %v278_v27 = vpop.permute.xlu0 %277 }
  0x94   : > { %v276_v28 = vpop.permute.xlu1 %275 }
  0x95   : > { %455 = vrot.lane.b32.xlu1 %v665_v8, %s676_s29  ;;  %442 = vrot.lane.b32.xlu0 %v434_v21, %s677_s30  ;;  %v280_v51 = vsel %vm279_vm0, %v274_v26, %v276_v28  ;;  %v281_v56 = vsel %vm279_vm0, %v276_v28, %v278_v27 }
  0x96   : > { %v284_v57 = vsel %vm260_vm2, %v280_v51, 0.0  ;;  %v285_v60 = vsel %vm261_vm5, %v281_v56, 0.0 }
  0x97   : > { %v331_v29 = vpop.permute.xlu0 %330  ;;  %v291_v61 = vmul.f32 %v289_v23, %v284_v57  ;;  %v292_v6 = vmul.f32 %v289_v23, %v285_v60 }
  0x98   : > { %v746_v30 = vpop.permute.xlu1 %373 }
  0x99   : > { %440 = vrot.lane.b32.xlu1 %v433_v22, %s677_s30  ;;  %v376_v16 = vmul.f32 %v746_v30, %v724_v10 }
  0x9b   : > { %v335_v31 = vpop.permute.xlu0 %334 }
  0x9c   : > { %v333_v32 = vpop.permute.xlu1 %332 }
  0x9d   : > { %v337_v53 = vsel %vm336_vm1, %v331_v29, %v333_v32  ;;  %v338_v62 = vsel %vm336_vm1, %v333_v32, %v335_v31 }
  0x9e   : > { %v341_v59 = vsel %vm322_vm4, %v337_v53, 0.0  ;;  %v342_v7 = vsel %vm323_vm7, %v338_v62, 0.0 }
  0x9f   : > { %v748_v33 = vpop.permute.xlu0 %400  ;;  %v347_v4 = vmul.f32 %v742_v24, %v341_v59  ;;  %v348_v18 = vmul.f32 %v742_v24, %v342_v7  ;;  %v377_v24 = vmul.f32 %v746_v30, %v722_v9 }
  0xa0   : > { %v352_v34 = vpop.permute.xlu1 %351 }
  0xa3   : > { %v356_v35 = vpop.permute.xlu0 %355 }
  0xa4   : > { %v354_v36 = vpop.permute.xlu1 %353 }
  0xa5   : > { %v358_v58 = vsel %vm357_vm3, %v352_v34, %v354_v36  ;;  %v359_v1 = vsel %vm357_vm3, %v354_v36, %v356_v35 }
  0xa6   : > { %v362_v2 = vsel %vm260_vm2, %v358_v58, 0.0  ;;  %v363_v8 = vsel %vm261_vm5, %v359_v1, 0.0 }
  0xa7   : > { %v387_v38 = vpop.permute.xlu0 %386  ;;  %v368_v11 = vmul.f32 %v744_v25, %v362_v2  ;;  %v369_v22 = vmul.f32 %v744_v25, %v363_v8 }
  0xa8   : > { %v750_v39 = vpop.permute.xlu1 %421 }
  0xab   : > { %v391_v41 = vpop.permute.xlu0 %390 }
  0xac   : > { %v389_v42 = vpop.permute.xlu1 %388 }
  0xad   : > { %v393_v12 = vsel %vm392_vm8, %v387_v38, %v389_v42  ;;  %v394_v19 = vsel %vm392_vm8, %v389_v42, %v391_v41 }
  0xae   : > { %v397_v23 = vsel %vm322_vm4, %v393_v12, 0.0  ;;  %v398_v10 = vsel %vm323_vm7, %v394_v19, 0.0 }
  0xaf   : > { %v408_v47 = vpop.permute.xlu0 %407  ;;  %v403_v32 = vmul.f32 %v748_v33, %v397_v23  ;;  %v404_v37 = vmul.f32 %v748_v33, %v398_v10 }
  0xb0   : > { %v752_v48 = vpop.permute.xlu1 %465 }
  0xb3   : > { %v412_v54 = vpop.permute.xlu0 %411 }
  0xb4   : > { %v410_v55 = vpop.permute.xlu1 %409 }
  0xb5   : > { %v414_v26 = vsel %vm413_vm9, %v408_v47, %v410_v55  ;;  %v415_v27 = vsel %vm413_vm9, %v410_v55, %v412_v54 }
  0xb6   : > { %v418_v25 = vsel %vm260_vm2, %v414_v26, 0.0  ;;  %v419_v36 = vsel %vm261_vm5, %v415_v27, 0.0 }
  0xb7   : > { %v424_v44 = vmul.f32 %v750_v39, %v418_v25  ;;  %v425_v9 = vmul.f32 %v750_v39, %v419_v36 }
  0xfb   : > { %v306_v63 = vpop.permute.xlu1 %305  ;;  %v308_v0 = vpop.permute.xlu0 %307 }
  0xfc   : > { %v312_v3 = vsel %vm311_vm6, %v306_v63, %v308_v0 }
  0xfd   : > { %v316_v5 = vadd.f32 %v312_v3, %v291_v61 }
  0xff   : > { %v349_v13 = vadd.f32 %v347_v4, %v316_v5  ;;  %v310_v14 = vpop.permute.xlu1 %309  ;;  %v454_v15 = vpop.permute.xlu0 %453 }
 0x100   : > { %v313_v17 = vsel %vm311_vm6, %v308_v0, %v310_v14 }
 0x101   : > { %v370_v20 = vadd.f32 %v368_v11, %v349_v13  ;;  %v317_v21 = vadd.f32 %v313_v17, %v292_v6 }
 0x103   : > { %v350_v28 = vadd.f32 %v348_v18, %v317_v21  ;;  %v452_v29 = vpop.permute.xlu1 %451  ;;  %v378_v31 = vadd.f32 %v376_v16, %v370_v20  ;;  %v439_v35 = vpop.permute.xlu0 %438 }
 0x104   : > { %v458_v38 = vsel %vm457_vm10, %v452_v29, %v454_v15 }
 0x105   : > { %v371_v34 = vadd.f32 %v369_v22, %v350_v28  ;;  %v405_v42 = vadd.f32 %v403_v32, %v378_v31  ;;  %v462_v45 = vsel %vm322_vm4, %v458_v38, 0.0 }
 0x106   : > { %v468_v55 = vmul.f32 %v752_v48, %v462_v45 }
 0x107   : > { %v456_v40 = vpop.permute.xlu1 %455  ;;  %v379_v41 = vadd.f32 %v377_v24, %v371_v34  ;;  %v443_v47 = vpop.permute.xlu0 %442  ;;  %v426_v50 = vadd.f32 %v424_v44, %v405_v42 }
 0x108   : > { %v459_v43 = vsel %vm457_vm10, %v454_v15, %v456_v40 }
 0x109   : > { %v406_v30 = vadd.f32 %v404_v37, %v379_v41  ;;  %v463_v46 = vsel %vm323_vm7, %v459_v43, 0.0 }
 0x10a   : > { %v469_v56 = vmul.f32 %v752_v48, %v463_v46 }
 0x10b   : > { %v441_v33 = vpop.permute.xlu1 %440  ;;  %v427_v51 = vadd.f32 %v425_v9, %v406_v30 }
 0x10c   : > { %v445_v53 = vsel %vm444_vm11, %v439_v35, %v441_v33  ;;  %v446_v54 = vsel %vm444_vm11, %v441_v33, %v443_v47 }
 0x10d   : > { %v449_v39 = vadd.f32 %v445_v53, %v426_v50  ;;  %v450_v57 = vadd.f32 %v446_v54, %v427_v51 }
 0x10f   : > { %v470_v49 = vadd.f32 %v468_v55, %v449_v39  ;;  %v471_v52 = vadd.f32 %v469_v56, %v450_v57 }
 0x111   : > { %472 = vst [vmem:[%s210_s7] sm:$0xff] %v470_v49  ;;  %473 = vst [vmem:[%s210_s7 + $0x8] sm:$0xff] %v471_v52  ;;  %v474_v58 = vadd.f32 %v471_v52, %v470_v49  ;;  %v478_v59 = vmul.f32 %v470_v49, %v470_v49  ;;  %v479_v60 = vmul.f32 %v471_v52, %v471_v52 }
 0x113   : > { %475 = vadd.xlane.f32.xlu1 %v474_v58  ;;  %v480_v61 = vadd.f32 %v479_v60, %v478_v59 }
 0x115   : > { %481 = vadd.xlane.f32.xlu0 %v480_v61 }
 0x1a0   : > { %v476_v48 = vpop.xlane.xlu1 %475 }
 0x1a1   : > { %477 = vst.msk [vmem:[%s214_s11] sm:$0xff] %vm357_vm3, %v476_v48 }
 0x1a2   : > { %v482_v62 = vpop.xlane.xlu0 %481 }
 0x1a3   : > { %483 = vst.msk [vmem:[%s218_s14] sm:$0xff] %vm357_vm3, %v482_v62 }
 0x1a4 PF: > { %s15_s15 = sadd.s32 1, %s658_s15  }
 0x1a5   : > { %p12_p4 = scmp.ge.s32.totalorder %s15_s15, 4  }
 0x1a7   :  { %14 = sbr.rel (!%p12_p4) target bundleno = 1 (0x1), region = 82 }

</bundles_post_ra>
